<compile_context>
chip_gen: v7x
topology: tpu7x:2x2x1
jax: 0.10.0
libtpu: 0.0.40
codegen_flags: <defaults>
</compile_context>

<pallas_src>
import functools

import numpy as np
import jax
import jax.numpy as jnp
from jax.experimental import pallas as pl
from jax.experimental.pallas import tpu as pltpu

LANES = 128
SUBLANES = 8
MAX_BLOCK_ROWS = 2048      # (2048, 128) f32 block = 1 MiB per input


def _huber_kernel(x_ref, xh_ref, o_ref, *, delta, rows_total, block_rows):
    """Per-block partial sums of the (delta^2-folded) smooth-L1 terms."""
    i = pl.program_id(0)

    r = x_ref[...].astype(jnp.float32) - xh_ref[...].astype(jnp.float32)
    ar = jnp.abs(r)
    # 0.5*r^2 (quadratic zone) vs delta*|r| - 0.5*delta^2 (linear zone).
    per_elem = jnp.where(ar < delta, 0.5 * r * r, delta * ar - 0.5 * delta * delta)

    # Mask rows past the true row count: the partial last block reads
    # unspecified data; jnp.where zeroes it even if it is inf/nan.
    row_ids = jax.lax.broadcasted_iota(jnp.int32, (block_rows, LANES), 0)
    valid = (row_ids + i * block_rows) < rows_total
    per_elem = jnp.where(valid, per_elem, 0.0)

    # Fold to a single (8,128) vreg slab: the reshape splits the sublane dim
    # on (8,128) tile boundaries, so the reduction is pure vreg-wise VALU
    # adds (no cross-lane XLU work in the hot path, hides under the DMA).
    folded = per_elem.reshape(block_rows // SUBLANES, SUBLANES, LANES).sum(axis=0)
    o_ref[...] = folded.reshape(1, SUBLANES, LANES)


def huber_loss(x, x_hat, delta=1.0):
    """Pallas TPU implementation of rlkit HuberLoss.forward (mean reduction)."""
    assert x.shape == x_hat.shape, "x and x_hat must have the same shape"
    n_elems = int(np.prod(x.shape))
    assert n_elems > 0

    xf = jnp.ravel(x)        # view-like, no extra HBM copy, no wrapper astype
    xhf = jnp.ravel(x_hat)

    granule = SUBLANES * LANES  # 1024
    pad = (-n_elems) % granule
    if pad:
        # Rare path (N not a multiple of 8*128): zero-pad both inputs so the
        # padded diff is exactly 0 and contributes nothing to the sum.
        xf = jnp.pad(xf, (0, pad))
        xhf = jnp.pad(xhf, (0, pad))

    rows = (n_elems + pad) // LANES           # multiple of 8
    block_rows = min(MAX_BLOCK_ROWS, rows)    # multiple of 8
    grid_n = (rows + block_rows - 1) // block_rows

    x2 = xf.reshape(rows, LANES)
    xh2 = xhf.reshape(rows, LANES)

    kernel = functools.partial(
        _huber_kernel,
        delta=float(delta),
        rows_total=rows,
        block_rows=block_rows,
    )

    partials = pl.pallas_call(
        kernel,
        out_shape=jax.ShapeDtypeStruct((grid_n, SUBLANES, LANES), jnp.float32),
        grid_spec=pltpu.PrefetchScalarGridSpec(
            num_scalar_prefetch=0,
            grid=(grid_n,),
            in_specs=[
                pl.BlockSpec((block_rows, LANES), lambda i: (i, 0)),
                pl.BlockSpec((block_rows, LANES), lambda i: (i, 0)),
            ],
            out_specs=pl.BlockSpec((1, SUBLANES, LANES), lambda i: (i, 0, 0)),
        ),
        compiler_params=pltpu.CompilerParams(
            # Independent per-block partial sums -> parallel grid axis
            # (shards across both TensorCores on v7x; harmless on v5e/v6e).
            dimension_semantics=("parallel",),
        ),
    )(x2, xh2)

    # Tiny final reduction + mean over the true element count.
    return jnp.sum(partials) / n_elems


def _reference(x, x_hat, delta=1.0):
    d = (x - x_hat) / delta
    ad = jnp.abs(d)
    e = jnp.where(ad < 1.0, 0.5 * d * d, ad - 0.5)
    return jnp.mean(e) * delta * delta


if __name__ == "__main__":
    key = jax.random.PRNGKey(0)
    k1, k2 = jax.random.split(key)
    # small shapes consistent with an element-wise loss over a batch of features
    x = jax.random.normal(k1, (2, 4, 16, 16), dtype=jnp.float32) * 2.0
    x_hat = jax.random.normal(k2, (2, 4, 16, 16), dtype=jnp.float32) * 2.0

    delta = 1.0  # default from the module __init__
    loss = huber_loss(x, x_hat, delta=delta)
    loss = jax.block_until_ready(loss)

    ref = _reference(x, x_hat, delta=delta)
    assert jnp.allclose(loss, ref, rtol=1e-5, atol=1e-6), (loss, ref)
    print("KERNEL_OK")
</pallas_src>

<mosaic_0001>
module attributes {stable_mosaic.version = 11 : i64} {
  func.func @_huber_kernel(%arg0: i32, %arg1: memref<16x128xf32, #tpu.memory_space<vmem>>, %arg2: memref<16x128xf32, #tpu.memory_space<vmem>>, %arg3: memref<1x8x128xf32, #tpu.memory_space<vmem>>) attributes {dimension_semantics = [#tpu.dimension_semantics<parallel>], iteration_bounds = array<i64: 1>, scalar_prefetch = 0 : i64, scratch_operands = 0 : i64, tpu.core_type = #tpu.core_type<tc>, window_params = [{transform_indices = @transform_0, window_bounds = array<i64: 16, 128>}, {transform_indices = @transform_1, window_bounds = array<i64: 16, 128>}, {transform_indices = @transform_2, window_bounds = array<i64: 1, 8, 128>}]} {
    %c0 = arith.constant 0 : index
    %c0_0 = arith.constant 0 : index
    %0 = vector.load %arg1[%c0, %c0_0] : memref<16x128xf32, #tpu.memory_space<vmem>>, vector<16x128xf32>
    %c0_1 = arith.constant 0 : index
    %c0_2 = arith.constant 0 : index
    %1 = vector.load %arg2[%c0_1, %c0_2] : memref<16x128xf32, #tpu.memory_space<vmem>>, vector<16x128xf32>
    %2 = arith.subf %0, %1 : vector<16x128xf32>
    %3 = math.absf %2 : vector<16x128xf32>
    %cst = arith.constant 1.000000e+00 : f32
    %4 = vector.broadcast %cst : f32 to vector<16x128xf32>
    %5 = arith.cmpf olt, %3, %4 : vector<16x128xf32>
    %cst_3 = arith.constant 5.000000e-01 : f32
    %6 = vector.broadcast %cst_3 : f32 to vector<16x128xf32>
    %7 = arith.mulf %6, %2 : vector<16x128xf32>
    %8 = arith.mulf %7, %2 : vector<16x128xf32>
    %cst_4 = arith.constant 1.000000e+00 : f32
    %9 = vector.broadcast %cst_4 : f32 to vector<16x128xf32>
    %10 = arith.mulf %9, %3 : vector<16x128xf32>
    %cst_5 = arith.constant 5.000000e-01 : f32
    %11 = vector.broadcast %cst_5 : f32 to vector<16x128xf32>
    %12 = arith.subf %10, %11 : vector<16x128xf32>
    %13 = arith.select %5, %8, %12 : vector<16x128xi1>, vector<16x128xf32>
    %14 = tpu.iota {dimensions = array<i32: 0>} : vector<16x128xi32>
    %c16_i32 = arith.constant 16 : i32
    %15 = arith.muli %arg0, %c16_i32 : i32
    %16 = vector.broadcast %15 : i32 to vector<16x128xi32>
    %17 = arith.addi %14, %16 : vector<16x128xi32>
    %c16_i32_6 = arith.constant 16 : i32
    %18 = vector.broadcast %c16_i32_6 : i32 to vector<16x128xi32>
    %19 = arith.cmpi slt, %17, %18 : vector<16x128xi32>
    %cst_7 = arith.constant 0.000000e+00 : f32
    %20 = vector.broadcast %cst_7 : f32 to vector<16x128xf32>
    %21 = arith.select %19, %13, %20 : vector<16x128xi1>, vector<16x128xf32>
    %22 = vector.shape_cast %21 : vector<16x128xf32> to vector<2x8x128xf32>
    %cst_8 = arith.constant dense<0.000000e+00> : vector<8x128xf32>
    %23 = vector.multi_reduction <add>, %22, %cst_8 [0] : vector<2x8x128xf32> to vector<8x128xf32>
    %24 = vector.shape_cast %23 : vector<8x128xf32> to vector<1x8x128xf32>
    %c0_9 = arith.constant 0 : index
    %c0_10 = arith.constant 0 : index
    %c0_11 = arith.constant 0 : index
    %25 = vector.load %arg3[%c0_9, %c0_10, %c0_11] : memref<1x8x128xf32, #tpu.memory_space<vmem>>, vector<1x8x128xf32>
    tpu.vector_store %arg3[%c0_9, %c0_10, %c0_11], %24 {strides = array<i32>} : memref<1x8x128xf32, #tpu.memory_space<vmem>>, vector<1x8x128xf32>,
    return
  }
  func.func @transform_0(%arg0: i32) -> (i32, i32) {
    %c0_i32 = arith.constant 0 : i32
    %c0_i32_0 = arith.constant 0 : i32
    return %arg0, %c0_i32 : i32, i32
  }
  func.func @transform_1(%arg0: i32) -> (i32, i32) {
    %c0_i32 = arith.constant 0 : i32
    %c0_i32_0 = arith.constant 0 : i32
    return %arg0, %c0_i32 : i32, i32
  }
  func.func @transform_2(%arg0: i32) -> (i32, i32, i32) {
    %c0_i32 = arith.constant 0 : i32
    %c0_i32_0 = arith.constant 0 : i32
    %c0_i32_1 = arith.constant 0 : i32
    return %arg0, %c0_i32, %c0_i32_0 : i32, i32, i32
  }
}

</mosaic_0001>

<bundles_post_ra>
// kernel: tpu_custom_call.1
= control target key start
LH: loop header
LB: loop body
LE: loop exit
PB: predicated region body
PF: predicated region fallthrough
CT: control target
= control target key end

     0   :  { %7 = vsyncpa [#allocation3], 0  ;;  %s222_s0 = inlined_call_operand.hbm [shape: f32[16,128], index: 0, kind: input, shape index: {}]   ;;  %s223_s1 = inlined_call_operand.hbm [shape: f32[16,128], index: 1, kind: input, shape index: {}]   ;;  %s224_s2 = inlined_call_operand.hbm [shape: f32[1,8,128], index: 2, kind: output, shape index: {}]  }
   0x1   :  { %8 = vsyncpa [#allocation6], 0 }
   0x2   :  { %9 = vsyncpa [#allocation4], 0  ;;  %s166_s9 = smov [#allocation2]   ;;  %s94_s13 = scalar_lea.hbm %s222_s0, 256 }
   0x3   :  { %s15_s10 = sshll.u32 %s166_s9, 4  ;;  %p95_p0 = scmp.ne.s32.totalorder %s222_s0, %s94_s13  ;;  %s16_s10 = int_to_ptr.vmem [resolvable:$true] %s15_s10 }
   0x4   :  { %p98_p1 = scmp.lt.u32.totalorder %s94_s13, %s222_s0 }
   0x6   :  { %p100_p2 = pnand %p98_p1, %p95_p0 }
   0x8   :  { %103 = shalt.err (!%p100_p2)
}
   0x9   :  { %s104_s18 = scalar_lea.vmem %s16_s10, 256  ;;  %p109_p4 = scmp.lt.s32.totalorder %s16_s10, %s16_s10 }
   0xa   :  { %p105_p3 = scmp.ne.s32.totalorder %s16_s10, %s104_s18  ;;  %p110_p5 = scmp.lt.s32.totalorder %s104_s18, %s104_s18 }
   0xc   :  { %p111_p6 = por %p110_p5, %p109_p4 }
   0xe   :  { %p112_p7 = pnand %p111_p6, %p105_p3 }
  0x10   :  { %115 = shalt.err (!%p112_p7)
}
  0x11   :  { %s167_s19 = smov 128   ;;  %s168_s20 = smov 8  }
  0x12   :  { %21 = dma.hbm_to_vmem [thread:$0]  %s222_s0, 256, %s16_s10, [#allocation3], %s167_s19, %s167_s19, %s168_s20  }
  0x13   :  { %s169_s23 = smov [#allocation5]   ;;  %s116_s27 = scalar_lea.hbm %s223_s1, 256 }
  0x14   :  { %s27_s24 = sshll.u32 %s169_s23, 4  ;;  %p117_p8 = scmp.ne.s32.totalorder %s223_s1, %s116_s27  ;;  %s28_s24 = int_to_ptr.vmem [resolvable:$true] %s27_s24 }
  0x15   :  { %p120_p9 = scmp.lt.u32.totalorder %s116_s27, %s223_s1 }
  0x17   :  { %p122_p10 = pnand %p120_p9, %p117_p8 }
  0x19   :  { %125 = shalt.err (!%p122_p10)
}
  0x1a   :  { %s126_s4 = scalar_lea.vmem %s28_s24, 256  ;;  %p131_p12 = scmp.lt.s32.totalorder %s28_s24, %s28_s24 }
  0x1b   :  { %p127_p11 = scmp.ne.s32.totalorder %s28_s24, %s126_s4  ;;  %p132_p13 = scmp.lt.s32.totalorder %s126_s4, %s126_s4 }
  0x1d   :  { %p133_p0 = por %p132_p13, %p131_p12 }
  0x1f   :  { %p134_p1 = pnand %p133_p0, %p127_p11 }
  0x21   :  { %137 = shalt.err (!%p134_p1)
}
  0x22   :  { %33 = dma.hbm_to_vmem [thread:$0]  %s223_s1, 256, %s28_s24, [#allocation6], %s167_s19, %s167_s19, %s168_s20  }
  0x23   :  { %160 = dma.done.wait [#allocation3], 256  }
  0x24   :  { %161 = vsyncadd [#allocation3], 4294967040 }
  0x25   :  { %162 = dma.done.wait [#allocation6], 256  }
  0x26   :  { %163 = vsyncadd [#allocation6], 4294967040  ;;  %v40_v0 = vld [vmem:[#allocation2] sm:$0xff]  ;;  %v41_v1 = vld [vmem:[#allocation2 + $0x8] sm:$0xff]  ;;  %s170_s1 = smov [#allocation7]  }
  0x27   :  { %v42_v2 = vld [vmem:[#allocation5] sm:$0xff]  ;;  %v43_v3 = vld [vmem:[#allocation5 + $0x8] sm:$0xff]  ;;  %s77_s6 = sshll.u32 %s170_s1, 4  ;;  %s78_s6 = int_to_ptr.vmem [resolvable:$true] %s77_s6 }
  0x28   :  { %v44_v4 = vsub.f32 %v40_v0, %v42_v2  ;;  %v45_v5 = vsub.f32 %v41_v1, %v43_v3  ;;  %s138_s7 = scalar_lea.vmem %s78_s6, 128  ;;  %p143_p3 = scmp.lt.s32.totalorder %s78_s6, %s78_s6 }
  0x29   :  { %p139_p2 = scmp.ne.s32.totalorder %s78_s6, %s138_s7  ;;  %p144_p4 = scmp.lt.s32.totalorder %s138_s7, %s138_s7 }
  0x2a   :  { %v46_v6 = vand.u32 2147483647, %v44_v4  ;;  %v50_v7 = vmul.f32 0.5, %v44_v4  ;;  %v47_v8 = vand.u32 2147483647, %v45_v5  ;;  %v51_v9 = vmul.f32 0.5, %v45_v5 }
  0x2b   :  { %p145_p5 = por %p144_p4, %p143_p3 }
  0x2c   :  { %vm48_vm0 = vcmp.lt.f32.partialorder %v46_v6, 1.0  ;;  %v52_v10 = vmul.f32 %v50_v7, %v44_v4  ;;  %v87_v11 = vadd.f32 -0.5, %v46_v6  ;;  %vm49_vm1 = vcmp.lt.f32.partialorder %v47_v8, 1.0 }
  0x2d   :  { %v53_v12 = vmul.f32 %v51_v9, %v45_v5  ;;  %v88_v13 = vadd.f32 -0.5, %v47_v8  ;;  %p146_p6 = pnand %p145_p5, %p139_p2 }
  0x2e   :  { %v56_v14 = vsel %vm48_vm0, %v52_v10, %v87_v11 }
  0x2f   :  { %v57_v15 = vsel %vm49_vm1, %v53_v12, %v88_v13 }
  0x30   :  { %v69_v16 = vadd.f32 %v57_v15, %v56_v14 }
  0x32   :  { %70 = vst [vmem:[#allocation7] sm:$0xff] %v69_v16 }
  0x33   :  { %149 = shalt.err (!%p146_p6)
}
  0x34   :  { %s150_s10 = scalar_lea.hbm %s224_s2, 128 }
  0x35   :  { %p151_p7 = scmp.ne.s32.totalorder %s224_s2, %s150_s10  ;;  %p154_p8 = scmp.lt.u32.totalorder %s150_s10, %s224_s2 }
  0x37   :  { %p156_p9 = pnand %p154_p8, %p151_p7 }
  0x39   :  { %159 = shalt.err (!%p156_p9)
}
  0x3a   :  { %80 = dma.vmem_to_hbm [thread:$0]  %s78_s6, 128, %s224_s2, [#allocation4]  }
  0x3b   :  { %164 = dma.done.wait [#allocation4], 128  }
  0x3c   :  { %165 = vsyncadd [#allocation4], 4294967168 }
  0x3d   :  { %84 = vsyncpa [#allocation3], 1 }
  0x3e   :  { %85 = vsyncpa [#allocation6], 1 }
  0x3f   :  { %86 = vsyncpa [#allocation4], 1 }

</bundles_post_ra>
